<compile_context>
chip_gen: v7x
topology: tpu7x:2x2x1
jax: 0.10.0
libtpu: 0.0.40
codegen_flags: <defaults>
</compile_context>

<pallas_src>
import functools

import jax
import jax.numpy as jnp
from jax import lax
from jax.experimental import pallas as pl
from jax.experimental.pallas import tpu as pltpu

_LANES = 128


def _mask_and_mean_kernel(info_ref, lens_ref, x_ref, out_ref, acc_ref, *, k, d):
    """One grid step = (batch tile bi, folded-time tile ti).

    info_ref : SMEM (grid_b, 2) int32   [:,0] last time tile holding valid data
                                        [:,1] #leading fully-valid time tiles
    lens_ref : VMEM (BB, 1) int32       valid length per batch row
    x_ref    : VMEM (BB, TTf, Dout)     folded (batch, time) tile
    out_ref  : VMEM (BB, Dout)          masked mean (written at last time tile)
    acc_ref  : VMEM (BB, Dout) float32  running masked sum across time tiles
    """
    bi = pl.program_id(0)
    ti = pl.program_id(1)

    @pl.when(ti == 0)
    def _init():
        acc_ref[...] = jnp.zeros_like(acc_ref)

    last_ti = info_ref[bi, 0]
    n_full = info_ref[bi, 1]

    # Fast path: every timestep of this tile is valid for every row of the
    # batch tile -> plain f32 sum, no compare/select/iota, keeps the VPU off
    # the critical path so interior tiles sit on the HBM/DMA roofline.
    @pl.when(ti < n_full)
    def _full_tile():
        acc_ref[...] += jnp.sum(x_ref[...].astype(jnp.float32), axis=1)

    # Boundary tiles: mask timesteps >= len.  Also covers the zero-padded T
    # tail, OOB rows of a partial batch tile (len == 0) and len == 0 rows.
    @pl.when(jnp.logical_and(ti >= n_full, ti <= last_ti))
    def _boundary_tile():
        bb, ttf, dout = x_ref.shape
        # Original time index of each element, built directly in x's layout
        # (folded time on sublanes, k*D on lanes): t = (ti*ttf + tf)*k + lane//D
        tf = lax.broadcasted_iota(jnp.int32, (ttf, dout), 0)
        t_idx = (ti * ttf + tf) * k
        if k > 1:
            lane = lax.broadcasted_iota(jnp.int32, (ttf, dout), 1)
            # 128 % D == 0  =>  D is a power of two  =>  shift, not a divide.
            t_idx = t_idx + jnp.right_shift(lane, d.bit_length() - 1)
        valid = t_idx[None, :, :] < lens_ref[...][:, :, None]      # (bb,ttf,dout)
        x = x_ref[...].astype(jnp.float32)
        acc_ref[...] += jnp.sum(jnp.where(valid, x, 0.0), axis=1)

    # Tiles with ti > last_ti hold no valid timesteps: their DMA was elided
    # (x index_map clamps to last_ti) and they contribute nothing.

    @pl.when(ti == pl.num_programs(1) - 1)
    def _finalize():
        # len == 0 -> 0 * inf = NaN, matching the PyTorch 0/0 behaviour.
        inv_len = pl.reciprocal(lens_ref[...].astype(jnp.float32), approx=False)
        out_ref[...] = (acc_ref[...] * inv_len).astype(out_ref.dtype)


def _choose_tiles(B, Tf, Dout, elem_bytes, t_pack, block_budget=16 * 1024 * 1024):
    """Pick (BB, TTf) so one (BB, TTf, Dout) x-block is ~block_budget bytes.

    Preference: grow TTf toward the full folded-time extent first (grid_t == 1
    removes the accumulator init/finalize), then add batch rows; keep BB a
    multiple of 8 (sublane tiling of the (BB,1) length block) and re-validate
    the budget after any round-up; when B >= 16 make sure grid_b >= 2 so the
    "parallel" batch axis can span both TensorCores on v7x.
    """
    row_bytes = Dout * elem_bytes
    # 1) time extent
    if Tf * row_bytes <= block_budget:
        tt = Tf
    else:
        tt = max(t_pack, (block_budget // row_bytes) // t_pack * t_pack)
    # 2) batch rows
    bb = max(1, block_budget // (tt * row_bytes))
    if bb >= B:
        bb = B
    else:
        bb = max(8, (bb // 8) * 8)
        if bb >= B:
            bb = B
    # 3) let the parallel batch axis span 2 TensorCores (v7x) when possible
    if bb >= B and B >= 16:
        bb = min(B, ((B + 1) // 2 + 7) // 8 * 8)
    # 4) re-validate the budget after the round-ups; shrink TTf to compensate
    while bb * tt * row_bytes > block_budget and tt > t_pack:
        tt = max(t_pack, (tt // 2) // t_pack * t_pack)
    return bb, tt


def mask_and_mean(convd_speech, chunk_timestep_len, max_pad=None,
                  block_b=None, block_t=None):
    """convd_speech: (B, T, D), chunk_timestep_len: (B,) or (B, 1) -> (B, D).

    `block_t` (optional override) is in ORIGINAL timesteps; after lane folding
    the folded tile (block_t // k) must be a multiple of 8 or the full extent.
    """
    del max_pad  # not used by the forward math (matches the PyTorch module)
    B, T, D = convd_speech.shape
    dtype = convd_speech.dtype
    elem_bytes = jnp.dtype(dtype).itemsize
    t_pack = max(8, 32 // elem_bytes)          # sublane packing: f32 8 / bf16 16 / i8 32

    # ---- lane folding: pack k = 128//D consecutive timesteps onto lanes ----
    k = _LANES // D if (D < _LANES and _LANES % D == 0) else 1
    x = convd_speech
    T_pad = pl.cdiv(T, k) * k
    if T_pad != T:
        # Padded timesteps sit at t >= T >= len and are masked out in-kernel.
        x = jnp.pad(x, ((0, 0), (0, T_pad - T), (0, 0)))
    Tf = T_pad // k
    Dout = k * D
    if k > 1:
        x = x.reshape(B, Tf, Dout)

    # ---- tile selection ----
    auto_bb, auto_tt = _choose_tiles(B, Tf, Dout, elem_bytes, t_pack)
    BB = auto_bb if block_b is None else block_b
    TTf = auto_tt if block_t is None else max(1, block_t // k)
    grid_b = pl.cdiv(B, BB)
    grid_t = pl.cdiv(Tf, TTf)
    B_pad = grid_b * BB
    ttk = TTf * k                              # original timesteps per time tile

    # ---- per-row lengths + per-batch-tile schedule (scalar prefetch) ----
    # Padded batch rows get len 0: fully masked, outputs dropped on writeback.
    lens = chunk_timestep_len.reshape(-1).astype(jnp.int32)
    lens = jnp.pad(lens, (0, B_pad - B))
    lens2d = lens.reshape(B_pad, 1)
    tile_lens = lens.reshape(grid_b, BB)
    tile_max = jnp.max(tile_lens, axis=1)
    tile_min = jnp.min(tile_lens, axis=1)
    last_ti = jnp.clip((tile_max + ttk - 1) // ttk - 1, 0, grid_t - 1)
    n_full = jnp.minimum(tile_min // ttk, grid_t)
    info = jnp.stack([last_ti, n_full], axis=1).astype(jnp.int32)   # (grid_b, 2)

    kernel = functools.partial(_mask_and_mean_kernel, k=k, d=D)

    out = pl.pallas_call(
        kernel,
        out_shape=jax.ShapeDtypeStruct((B, Dout), dtype),
        grid_spec=pltpu.PrefetchScalarGridSpec(
            num_scalar_prefetch=1,
            grid=(grid_b, grid_t),
            in_specs=[
                pl.BlockSpec((BB, 1), lambda bi, ti, info_ref: (bi, 0)),
                # Clamp the time block index to the last tile that holds any
                # valid timestep for this batch tile: repeated block index
                # => Pallas skips the re-fetch (no HBM traffic for padding).
                pl.BlockSpec(
                    (BB, TTf, Dout),
                    lambda bi, ti, info_ref: (bi, jnp.minimum(ti, info_ref[bi, 0]), 0)),
            ],
            out_specs=pl.BlockSpec((BB, Dout), lambda bi, ti, info_ref: (bi, 0)),
            scratch_shapes=[pltpu.VMEM((BB, Dout), jnp.float32)],
        ),
        compiler_params=pltpu.CompilerParams(
            dimension_semantics=("parallel", "arbitrary"),
            vmem_limit_bytes=48 * 1024 * 1024,
        ),
        cost_estimate=pl.CostEstimate(
            flops=2 * B * T * D,
            transcendentals=0,
            bytes_accessed=B_pad * Tf * Dout * elem_bytes
                           + B * Dout * elem_bytes + B_pad * 4,
        ),
    )(info, lens2d, x)

    if k > 1:
        # Un-fold: each of the k lane-slots holds a partial masked mean; their
        # sum is the true masked mean.  Tiny (B, 128) op, done in f32.
        out = out.astype(jnp.float32).reshape(B, k, D).sum(axis=1).astype(dtype)
    return out


def _reference(x, lens):
    B, T, _ = x.shape
    lens_f = lens.reshape(B, 1).astype(jnp.float32)
    keep = jnp.arange(T)[None, :, None] < lens.reshape(B, 1, 1)
    s = jnp.sum(jnp.where(keep, x.astype(jnp.float32), 0.0), axis=1)
    return (s / lens_f).astype(x.dtype)


if __name__ == "__main__":
    key = jax.random.PRNGKey(0)
    k1, k2, k3 = jax.random.split(key, 3)

    # --- test 1: module-sized shapes (batch=2, seq=16, hidden_dim=32), k=4 fold ---
    B, T, D = 2, 16, 32
    x1 = jax.random.normal(k1, (B, T, D), dtype=jnp.float32)
    lens1 = jnp.array([10, 16], dtype=jnp.int32)
    out1 = jax.block_until_ready(mask_and_mean(x1, lens1, max_pad=0))
    ref1 = _reference(x1, lens1)
    assert out1.shape == (B, D)
    assert jnp.allclose(out1, ref1, atol=1e-5, rtol=1e-4), "test1 mismatch"

    # --- test 2: folded multi-tile path (fast tiles, skipped tiles, boundary
    #     tiles, partial batch tile with padded rows) ---
    B2, T2, D2 = 20, 64, 32
    x2 = jax.random.normal(k2, (B2, T2, D2), dtype=jnp.float32)
    lens2 = jnp.concatenate([
        jnp.full((8,), 64, dtype=jnp.int32),                 # fully valid tile
        (jnp.arange(8, dtype=jnp.int32) % 29) + 1,           # 2nd time tile skipped
        jnp.array([5, 33, 64, 17], dtype=jnp.int32),         # mixed, partial batch tile
    ])
    out2 = jax.block_until_ready(
        mask_and_mean(x2, lens2, max_pad=0, block_b=8, block_t=32))
    ref2 = _reference(x2, lens2)
    assert out2.shape == (B2, D2)
    assert jnp.allclose(out2, ref2, atol=1e-5, rtol=1e-4), "test2 mismatch"

    # --- test 3: unfolded path (D=128), multi batch-tile (2-TC style split) ---
    B3, T3, D3 = 16, 48, 128
    x3 = jax.random.normal(k3, (B3, T3, D3), dtype=jnp.float32)
    lens3 = (jnp.arange(B3, dtype=jnp.int32) * 5) % T3 + 1
    out3 = jax.block_until_ready(
        mask_and_mean(x3, lens3, max_pad=0, block_t=24))
    ref3 = _reference(x3, lens3)
    assert out3.shape == (B3, D3)
    assert jnp.allclose(out3, ref3, atol=1e-5, rtol=1e-4), "test3 mismatch"

    print("KERNEL_OK")
</pallas_src>

<mosaic_0001>
module attributes {stable_mosaic.version = 11 : i64} {
  func.func @_mask_and_mean_kernel(%arg0: i32, %arg1: i32, %arg2: memref<1x2xi32, #tpu.memory_space<smem>>, %arg3: memref<2x1xi32, #tpu.memory_space<vmem>>, %arg4: memref<2x4x128xf32, #tpu.memory_space<vmem>>, %arg5: memref<2x128xf32, #tpu.memory_space<vmem>>, %arg6: memref<2x128xf32, #tpu.memory_space<vmem>>) attributes {dimension_semantics = [#tpu.dimension_semantics<parallel>, #tpu.dimension_semantics<arbitrary>], iteration_bounds = array<i64: 1, 1>, scalar_prefetch = 1 : i64, scratch_operands = 1 : i64, tpu.core_type = #tpu.core_type<tc>, window_params = [{transform_indices = @transform_0, window_bounds = array<i64: 2, 1>}, {transform_indices = @transform_1, window_bounds = array<i64: 2, 4, 128>}, {transform_indices = @transform_2, window_bounds = array<i64: 2, 128>}]} {
    %c0_i32 = arith.constant 0 : i32
    %0 = arith.cmpi eq, %arg1, %c0_i32 : i32
    %1 = arith.extui %0 : i1 to i32
    %c0_i32_0 = arith.constant 0 : i32
    %2 = arith.cmpi ne, %1, %c0_i32_0 : i32
    scf.if %2 {
      %cst = arith.constant 0.000000e+00 : f32
      %18 = vector.broadcast %cst : f32 to vector<2x128xf32>
      %c0_5 = arith.constant 0 : index
      %c0_6 = arith.constant 0 : index
      %19 = vector.load %arg6[%c0_5, %c0_6] : memref<2x128xf32, #tpu.memory_space<vmem>>, vector<2x128xf32>
      tpu.vector_store %arg6[%c0_5, %c0_6], %18 {strides = array<i32>} : memref<2x128xf32, #tpu.memory_space<vmem>>, vector<2x128xf32>,
    } else {
    }
    %3 = arith.index_cast %arg0 : i32 to index
    %c0 = arith.constant 0 : index
    %4 = memref.load %arg2[%3, %c0] : memref<1x2xi32, #tpu.memory_space<smem>>
    %5 = arith.index_cast %arg0 : i32 to index
    %c1 = arith.constant 1 : index
    %6 = memref.load %arg2[%5, %c1] : memref<1x2xi32, #tpu.memory_space<smem>>
    %7 = arith.cmpi slt, %arg1, %6 : i32
    %8 = arith.extui %7 : i1 to i32
    %c0_i32_1 = arith.constant 0 : i32
    %9 = arith.cmpi ne, %8, %c0_i32_1 : i32
    scf.if %9 {
      %c0_5 = arith.constant 0 : index
      %c0_6 = arith.constant 0 : index
      %18 = vector.load %arg6[%c0_5, %c0_6] : memref<2x128xf32, #tpu.memory_space<vmem>>, vector<2x128xf32>
      %c0_7 = arith.constant 0 : index
      %c0_8 = arith.constant 0 : index
      %c0_9 = arith.constant 0 : index
      %19 = vector.load %arg4[%c0_7, %c0_8, %c0_9] : memref<2x4x128xf32, #tpu.memory_space<vmem>>, vector<2x4x128xf32>
      %cst = arith.constant dense<0.000000e+00> : vector<2x128xf32>
      %20 = vector.multi_reduction <add>, %19, %cst [1] : vector<2x4x128xf32> to vector<2x128xf32>
      %21 = arith.addf %18, %20 : vector<2x128xf32>
      %c0_10 = arith.constant 0 : index
      %c0_11 = arith.constant 0 : index
      %22 = vector.load %arg6[%c0_10, %c0_11] : memref<2x128xf32, #tpu.memory_space<vmem>>, vector<2x128xf32>
      tpu.vector_store %arg6[%c0_10, %c0_11], %21 {strides = array<i32>} : memref<2x128xf32, #tpu.memory_space<vmem>>, vector<2x128xf32>,
    } else {
    }
    %10 = arith.cmpi sge, %arg1, %6 : i32
    %11 = arith.cmpi sle, %arg1, %4 : i32
    %12 = arith.andi %10, %11 : i1
    %13 = arith.extui %12 : i1 to i32
    %c0_i32_2 = arith.constant 0 : i32
    %14 = arith.cmpi ne, %13, %c0_i32_2 : i32
    scf.if %14 {
      %18 = tpu.iota {dimensions = array<i32: 0>} : vector<4x128xi32>
      %c4_i32 = arith.constant 4 : i32
      %19 = arith.muli %arg1, %c4_i32 : i32
      %20 = vector.broadcast %19 : i32 to vector<4x128xi32>
      %21 = arith.addi %20, %18 : vector<4x128xi32>
      %c4_i32_5 = arith.constant 4 : i32
      %22 = vector.broadcast %c4_i32_5 : i32 to vector<4x128xi32>
      %23 = arith.muli %21, %22 : vector<4x128xi32>
      %24 = tpu.iota {dimensions = array<i32: 1>} : vector<4x128xi32>
      %c5_i32 = arith.constant 5 : i32
      %25 = vector.broadcast %c5_i32 : i32 to vector<4x128xi32>
      %26 = arith.shrsi %24, %25 : vector<4x128xi32>
      %27 = arith.addi %23, %26 : vector<4x128xi32>
      %28 = vector.shape_cast %27 : vector<4x128xi32> to vector<1x4x128xi32>
      %c0_6 = arith.constant 0 : index
      %c0_7 = arith.constant 0 : index
      %29 = vector.load %arg3[%c0_6, %c0_7] : memref<2x1xi32, #tpu.memory_space<vmem>>, vector<2x1xi32>
      %30 = vector.shape_cast %29 : vector<2x1xi32> to vector<2x1x1xi32>
      %31 = vector.broadcast %28 : vector<1x4x128xi32> to vector<2x4x128xi32>
      %32 = vector.broadcast %30 : vector<2x1x1xi32> to vector<2x4x128xi32>
      %33 = arith.cmpi slt, %31, %32 : vector<2x4x128xi32>
      %c0_8 = arith.constant 0 : index
      %c0_9 = arith.constant 0 : index
      %c0_10 = arith.constant 0 : index
      %34 = vector.load %arg4[%c0_8, %c0_9, %c0_10] : memref<2x4x128xf32, #tpu.memory_space<vmem>>, vector<2x4x128xf32>
      %c0_11 = arith.constant 0 : index
      %c0_12 = arith.constant 0 : index
      %35 = vector.load %arg6[%c0_11, %c0_12] : memref<2x128xf32, #tpu.memory_space<vmem>>, vector<2x128xf32>
      %cst = arith.constant 0.000000e+00 : f32
      %36 = vector.broadcast %cst : f32 to vector<2x4x128xf32>
      %37 = arith.select %33, %34, %36 : vector<2x4x128xi1>, vector<2x4x128xf32>
      %cst_13 = arith.constant dense<0.000000e+00> : vector<2x128xf32>
      %38 = vector.multi_reduction <add>, %37, %cst_13 [1] : vector<2x4x128xf32> to vector<2x128xf32>
      %39 = arith.addf %35, %38 : vector<2x128xf32>
      %c0_14 = arith.constant 0 : index
      %c0_15 = arith.constant 0 : index
      %40 = vector.load %arg6[%c0_14, %c0_15] : memref<2x128xf32, #tpu.memory_space<vmem>>, vector<2x128xf32>
      tpu.vector_store %arg6[%c0_14, %c0_15], %39 {strides = array<i32>} : memref<2x128xf32, #tpu.memory_space<vmem>>, vector<2x128xf32>,
    } else {
    }
    %c0_i32_3 = arith.constant 0 : i32
    %15 = arith.cmpi eq, %arg1, %c0_i32_3 : i32
    %16 = arith.extui %15 : i1 to i32
    %c0_i32_4 = arith.constant 0 : i32
    %17 = arith.cmpi ne, %16, %c0_i32_4 : i32
    scf.if %17 {
      %c0_5 = arith.constant 0 : index
      %c0_6 = arith.constant 0 : index
      %18 = vector.load %arg3[%c0_5, %c0_6] : memref<2x1xi32, #tpu.memory_space<vmem>>, vector<2x1xi32>
      %19 = arith.sitofp %18 : vector<2x1xi32> to vector<2x1xf32>
      %20 = tpu.reciprocal %19 : vector<2x1xf32> -> vector<2x1xf32>
      %c0_7 = arith.constant 0 : index
      %c0_8 = arith.constant 0 : index
      %21 = vector.load %arg6[%c0_7, %c0_8] : memref<2x128xf32, #tpu.memory_space<vmem>>, vector<2x128xf32>
      %22 = vector.broadcast %20 : vector<2x1xf32> to vector<2x128xf32>
      %23 = arith.mulf %21, %22 : vector<2x128xf32>
      %c0_9 = arith.constant 0 : index
      %c0_10 = arith.constant 0 : index
      %24 = vector.load %arg5[%c0_9, %c0_10] : memref<2x128xf32, #tpu.memory_space<vmem>>, vector<2x128xf32>
      tpu.vector_store %arg5[%c0_9, %c0_10], %23 {strides = array<i32>} : memref<2x128xf32, #tpu.memory_space<vmem>>, vector<2x128xf32>,
    } else {
    }
    return
  }
  func.func @transform_0(%arg0: i32, %arg1: i32, %arg2: memref<1x2xi32, #tpu.memory_space<smem>>) -> (i32, i32) {
    %c0_i32 = arith.constant 0 : i32
    %c0_i32_0 = arith.constant 0 : i32
    return %arg0, %c0_i32 : i32, i32
  }
  func.func @transform_1(%arg0: i32, %arg1: i32, %arg2: memref<1x2xi32, #tpu.memory_space<smem>>) -> (i32, i32, i32) {
    %0 = arith.index_cast %arg0 : i32 to index
    %c0 = arith.constant 0 : index
    %1 = memref.load %arg2[%0, %c0] : memref<1x2xi32, #tpu.memory_space<smem>>
    %2 = arith.minsi %arg1, %1 : i32
    %c0_i32 = arith.constant 0 : i32
    %c0_i32_0 = arith.constant 0 : i32
    return %arg0, %2, %c0_i32 : i32, i32, i32
  }
  func.func @transform_2(%arg0: i32, %arg1: i32, %arg2: memref<1x2xi32, #tpu.memory_space<smem>>) -> (i32, i32) {
    %c0_i32 = arith.constant 0 : i32
    %c0_i32_0 = arith.constant 0 : i32
    return %arg0, %c0_i32 : i32, i32
  }
}

</mosaic_0001>

<bundles_post_ra>
// kernel: tpu_custom_call.1
= control target key start
LH: loop header
LB: loop body
LE: loop exit
PB: predicated region body
PF: predicated region fallthrough
CT: control target
= control target key end

     0   :  { %s333_s0 = inlined_call_operand.vmem [shape: s32[1,2], index: 0, kind: input, shape index: {}]   ;;  %s334_s1 = inlined_call_operand.vmem [shape: s32[2,1], index: 1, kind: input, shape index: {}]   ;;  %s335_s2 = inlined_call_operand.vmem [shape: f32[2,4,128], index: 2, kind: input, shape index: {}]   ;;  %s336_s3 = inlined_call_operand.hbm [shape: f32[2,128], index: 3, kind: output, shape index: {}]  }
   0x1   :  { %s8_s14 = sshll.u32 %s333_s0, 4  ;;  %s9_s14 = int_to_ptr.vmem [resolvable:$true] %s8_s14 }
   0x2   :  { %s226_s15 = scalar_lea.vmem %s9_s14, 16  ;;  %p231_p1 = scmp.lt.s32.totalorder %s9_s14, %s9_s14 }
   0x3   :  { %p227_p0 = scmp.ne.s32.totalorder %s9_s14, %s226_s15  ;;  %p232_p2 = scmp.lt.s32.totalorder %s226_s15, %s226_s15 }
   0x5   :  { %p233_p3 = por %p232_p2, %p231_p1 }
   0x7   :  { %p234_p4 = pnand %p233_p3, %p227_p0 }
   0x9   :  { %237 = shalt.err (!%p234_p4)  }
   0xa   :  { %s264_s16 = smov [#allocation4]  }
   0xb   :  { %11 = dma.vmem_to_smem %s9_s14, 16, %s264_s16, [#allocation3] }
   0xc   :  { %260 = dma.done.wait [#allocation3], 16 }
   0xd   :  { %261 = vsyncadd [#allocation3], 4294967280 }
   0xe   :  { %13 = sfence }
   0xf   :  { %14 = vsyncpa [#allocation6], 0  ;;  %s293_s17 = sld [smem:[#allocation4]]  ;;  %v265_v0 = vmov 0.0   ;;  %s295_s0 = sld [smem:[#allocation4 + $0x1]] }
  0x10   :  { %55 = vst [vmem:[#allocation2] sm:$0x3] %v265_v0 }
  0x15   :  { %p205_p5 = scmp.gt.s32.totalorder %s293_s17, 0  ;;  %p207_p6 = scmp.lt.s32.totalorder %s293_s17, 0 }
  0x16   :  { %p212_p7 = scmp.le.s32.totalorder %s295_s0, 0 }
  0x17   :  { %s42_s18 = scalar_select %p205_p5, 0, %s293_s17 }
  0x18   :  { %63 = sbr.rel (%p212_p7) target bundleno = 46 (0x2e), region = 17  ;;  %vm67_vm0 = vcmask (!%p212_p7), 1043456   ;;  %vm84_vm1 = vcmask (!%p212_p7), 1041409   ;;  %v64_v15 = vld [vmem:[#allocation2] sm:$0x3] (!%p212_p7) }
  0x19   :  { %s338_s18 = smov (!%p207_p6, %s42_s18), 0 }
  0x1a   :  { %s209_s19 = sshll.u32 %s338_s18, 2 }
  0x1b   :  { %s303_s22 = scalar_lea.vmem %s335_s2, %s209_s19 }
  0x1c   :  { %v65_v1 = vld [vmem:[%s303_s22] sm:$0xf] (!%p212_p7)  ;;  %v66_v2 = vld [vmem:[%s303_s22 + $0x4] sm:$0xf] (!%p212_p7) }
  0x1d   :  { %v68_v3 = vsel (!%p212_p7), %vm67_vm0, %v65_v1, 0.0  ;;  %v75_v4 = vsel (!%p212_p7), %vm67_vm0, %v66_v2, 0.0 }
  0x1e   :  { %v69_v5 = vrot.slane (!%p212_p7), %v68_v3, 4  ;;  %v76_v6 = vrot.slane (!%p212_p7), %v75_v4, 4 }
  0x20   :  { %v70_v7 = vadd.f32 %v69_v5, %v68_v3  ;;  %v77_v8 = vadd.f32 %v76_v6, %v75_v4 }
  0x22   :  { %v71_v9 = vrot.slane %v70_v7, 2  ;;  %v78_v10 = vrot.slane %v77_v8, 2 }
  0x24   :  { %v72_v11 = vadd.f32 %v71_v9, %v70_v7  ;;  %v79_v12 = vadd.f32 %v78_v10, %v77_v8 }
  0x26   :  { %v73_v13 = vrot.slane %v72_v11, 1  ;;  %v80_v14 = vrot.slane %v79_v12, 1 }
  0x28   :  { %v74_v16 = vadd.f32 %v73_v13, %v72_v11  ;;  %v81_v17 = vadd.f32 %v80_v14, %v79_v12 }
  0x2a   :  { %v85_v18 = vsel %vm84_vm1, %v81_v17, %v74_v16 }
  0x2b   :  { %v87_v19 = vadd.f32 %v85_v18, %v64_v15 }
  0x2d   :  { %88 = vst [vmem:[#allocation2] sm:$0x3] %v87_v19 }
  0x2e PF:  { %p214_p8 = scmp.ge.s32.totalorder %s293_s17, 0 }
  0x30   :  { %p91_p9 = pnand %p214_p8, %p212_p7 }
  0x31   :  { %v95_v20 = vlaneseq (!%p91_p9)  ;;  %v266_v21 = vmov (!%p91_p9), 0   ;;  %v267_v23 = vmov (!%p91_p9), 1966171168   ;;  %v144_v38 = vld [vmem:[%s303_s22] sm:$0xf] (!%p91_p9)  ;;  %vm149_vm2 = vcmask (!%p91_p9), 1043456  }
  0x32   :  { %94 = sbr.rel (%p91_p9) target bundleno = 211 (0xd3), region = 21  ;;  %222 = vset.pattern.permute.xlu0 (!%p91_p9), %v266_v21  ;;  %v115_v24 = vunpack.c.l.s4 (!%p91_p9), %v267_v23  ;;  %v215_v26 = vld.sshfl [vmem:[%s334_s1] sm:$0x11 pattern:$0x75316420] (!%p91_p9)  ;;  %vm166_vm5 = vcmask (!%p91_p9), 1041409  }
  0x33   :  { %v96_v22 = vshrl.u32 (!%p91_p9), %v95_v20, 7  ;;  %v102_v25 = vand.u32 (!%p91_p9), 127, %v95_v20  ;;  %v113_v27 = vcombine.high (!%p91_p9), %v215_v26, %v215_v26  ;;  %v145_v42 = vld [vmem:[%s303_s22 + $0x4] sm:$0xf] (!%p91_p9) }
  0x34   :  { %v116_v28 = vunpack.c.0.s8 (!%p91_p9), %v115_v24  ;;  %v146_v57 = vld [vmem:[#allocation2] sm:$0x3] (!%p91_p9) }
  0x35   :  { %v130_v30 = vsub.s32 (!%p91_p9), 0, %v96_v22  ;;  %v103_v31 = vshra.s32 (!%p91_p9), %v102_v25, 5  ;;  %v100_v34 = vmul.u32 (!%p91_p9), 4, %v96_v22 }
  0x36   :  { %v119_v29 = vsub.s32 (!%p91_p9), %v116_v28, %v96_v22 }
  0x37   :  { %v104_v36 = vadd.s32 (!%p91_p9), %v103_v31, %v100_v34 }
  0x38   :  { %v120_v32 = vrot.slane (!%p91_p9), %v215_v26, %v119_v29  ;;  %v127_v33 = vrot.slane (!%p91_p9), %v113_v27, %v119_v29 }
  0x3a   :  { %v131_v35 = vrot.slane %v120_v32, %v130_v30  ;;  %v135_v37 = vrot.slane %v127_v33, %v130_v30 }
  0x3c   :  { %137 = vperm.xlu0 %222, %v131_v35  }
  0x40   :  { %140 = vperm.xlu0 %222, %v135_v37  }
  0xbb   :  { %v138_v39 = vpop.permute.xlu0 %137 }
  0xbc   :  { %vm142_vm3 = vcmp.lt.s32.totalorder %v104_v36, %v138_v39 }
  0xbd   :  { %v147_v40 = vsel %vm142_vm3, %v144_v38, 0.0 }
  0xbe   :  { %v150_v41 = vsel %vm149_vm2, %v147_v40, 0.0 }
  0xbf   :  { %v151_v43 = vrot.slane %v150_v41, 4  ;;  %v141_v44 = vpop.permute.xlu0 %140 }
  0xc0   :  { %vm143_vm4 = vcmp.lt.s32.totalorder %v104_v36, %v141_v44 }
  0xc1   :  { %v152_v45 = vadd.f32 %v151_v43, %v150_v41  ;;  %v148_v46 = vsel %vm143_vm4, %v145_v42, 0.0 }
  0xc2   :  { %v157_v47 = vsel %vm149_vm2, %v148_v46, 0.0 }
  0xc3   :  { %v153_v48 = vrot.slane %v152_v45, 2  ;;  %v158_v49 = vrot.slane %v157_v47, 4 }
  0xc5   :  { %v154_v50 = vadd.f32 %v153_v48, %v152_v45  ;;  %v159_v51 = vadd.f32 %v158_v49, %v157_v47 }
  0xc7   :  { %v160_v52 = vrot.slane %v159_v51, 2  ;;  %v155_v53 = vrot.slane %v154_v50, 1 }
  0xc9   :  { %v161_v54 = vadd.f32 %v160_v52, %v159_v51  ;;  %v156_v56 = vadd.f32 %v155_v53, %v154_v50 }
  0xcb   :  { %v162_v55 = vrot.slane %v161_v54, 1 }
  0xcd   :  { %v163_v58 = vadd.f32 %v162_v55, %v161_v54 }
  0xcf   :  { %v167_v59 = vsel %vm166_vm5, %v163_v58, %v156_v56 }
  0xd0   :  { %v169_v60 = vadd.f32 %v167_v59, %v146_v57 }
  0xd2   :  { %170 = vst [vmem:[#allocation2] sm:$0x3] %v169_v60 }
  0xd3 PF:  { %v174_v61 = vld [vmem:[%s334_s1] sm:$0x3]  ;;  %v268_v62 = vmov 0   ;;  %s269_s26 = smov [#allocation5]  }
  0xd4   :  { %223 = vset.pattern.permute.xlu0 %v268_v62  ;;  %v175_v63 = vcvt.s32.f32 %v174_v61  ;;  %s191_s27 = sshll.u32 %s269_s26, 4  ;;  %s192_s27 = int_to_ptr.vmem [resolvable:$true] %s191_s27 }
  0xd5   :  { %s238_s28 = scalar_lea.vmem %s192_s27, 32  ;;  %p243_p11 = scmp.lt.s32.totalorder %s192_s27, %s192_s27 }
  0xd6   :  { %224 = vrcp.f32 %v175_v63  ;;  %p239_p10 = scmp.ne.s32.totalorder %s192_s27, %s238_s28  ;;  %p244_p12 = scmp.lt.s32.totalorder %s238_s28, %s238_s28 }
  0xd8   :  { %p245_p13 = por %p244_p12, %p243_p11 }
  0xd9   :  { %v177_v1 = vld [vmem:[#allocation2] sm:$0x3] }
  0xda   :  { %p246_p0 = pnand %p245_p13, %p239_p10 }
  0xe0   :  { %v225_v0 = vpop.eup %224 }
  0xe1   :  { %180 = vperm.xlu0 %223, %v225_v0  }
 0x160   :  { %v181_v2 = vpop.permute.xlu0 %180 }
 0x161   :  { %v183_v3 = vmul.f32 %v181_v2, %v177_v1 }
 0x163   :  { %184 = vst [vmem:[#allocation5] sm:$0x3] %v183_v3 }
 0x164   :  { %249 = shalt.err (!%p246_p0)
}
 0x165   :  { %s250_s30 = scalar_lea.hbm %s336_s3, 32 }
 0x166   :  { %p251_p1 = scmp.ne.s32.totalorder %s336_s3, %s250_s30  ;;  %p254_p2 = scmp.lt.u32.totalorder %s250_s30, %s336_s3 }
 0x168   :  { %p256_p3 = pnand %p254_p2, %p251_p1 }
 0x16a   :  { %259 = shalt.err (!%p256_p3)
}
 0x16b   :  { %194 = dma.vmem_to_hbm [thread:$0]  %s192_s27, 32, %s336_s3, [#allocation6]  }
 0x16c   :  { %262 = dma.done.wait [#allocation6], 32  }
 0x16d   :  { %263 = vsyncadd [#allocation6], 4294967264 }
 0x16e   :  { %198 = vsyncpa [#allocation6], 1 }

</bundles_post_ra>
